<compile_context>
chip_gen: v7x
topology: tpu7x:2x2x1
jax: 0.10.0
libtpu: 0.0.40
codegen_flags: <defaults>
</compile_context>

<pallas_src>
import functools

import jax
import jax.numpy as jnp
from jax import lax
from jax.experimental import pallas as pl
from jax.experimental.pallas import tpu as pltpu

LANE = 128


# --------------------------------------------------------------------------
# small helpers (glue)
# --------------------------------------------------------------------------
def choose_tile(n, max_tile):
    t = ((n + LANE - 1) // LANE) * LANE
    return max(LANE, min(max_tile, t))


def pad_lanes(x, tile, pad_value=0.0):
    n = x.shape[-1]
    extra = (-n) % tile
    if extra == 0:
        return x
    pads = [(0, 0)] * (x.ndim - 1) + [(0, extra)]
    return jnp.pad(x, pads, constant_values=pad_value)


# --------------------------------------------------------------------------
# Pallas kernel 1: per-pixel 1x1-conv feature projection (+ ReLU) on the MXU
# TODO(synk): the reference FeatureNet (multi-scale conv stack) definition is
# not provided; this 1x1-conv stand-in reproduces only the per-pixel linear
# channel mixing in-kernel.
# --------------------------------------------------------------------------
def _feat_kernel(x_ref, w_ref, b_ref, o_ref):
    x = x_ref[0]                                             # (Cin, TN) f32
    y = jnp.dot(w_ref[...], x, preferred_element_type=jnp.float32)  # MXU
    o_ref[0] = jnp.maximum(y + b_ref[...], 0.0)


def feature_1x1(x, w, b, *, max_tile=512):
    # x: (B, Cin, N) f32
    B, Cin, N = x.shape
    Cout = w.shape[0]
    tn = choose_tile(N, max_tile)
    xp = pad_lanes(x, tn)
    Np = xp.shape[-1]
    out = pl.pallas_call(
        _feat_kernel,
        out_shape=jax.ShapeDtypeStruct((B, Cout, Np), jnp.float32),
        grid=(B, Np // tn),
        in_specs=[
            pl.BlockSpec((1, Cin, tn), lambda bi, ti: (bi, 0, ti)),
            pl.BlockSpec((Cout, Cin), lambda bi, ti: (0, 0)),
            pl.BlockSpec((Cout, 1), lambda bi, ti: (0, 0)),
        ],
        out_specs=pl.BlockSpec((1, Cout, tn), lambda bi, ti: (bi, 0, ti)),
        compiler_params=pltpu.CompilerParams(
            dimension_semantics=("parallel", "parallel")),
    )(xp, w, b)
    return out[:, :, :N]


# --------------------------------------------------------------------------
# Pallas kernel 2: fused compute_depth hot path
#   cost-volume variance over views -> cost regularization (per-voxel linear
#   stand-in for CostRegNet) accumulated over channel chunks (grid reduction
#   axis) -> softmax over depth -> depth regression -> 4-tap confidence ->
#   expected variance.  Outputs packed lane-dense as (B, 3, N).
# TODO(synk): the reference CostRegNet (3D U-Net) definition is not provided;
# a per-voxel C->1 linear regularizer is used in-kernel instead (its sign is
# free via the learned weights, matching cost_reg's unconstrained output).
# --------------------------------------------------------------------------
def _depth_kernel(ref_ref, warp_ref, ds_ref, w_ref, b_ref, out_ref, cost_ref,
                  *, num_views, num_src, tc, lamb):
    D = ds_ref.shape[1]
    TN = ds_ref.shape[2]
    ci = pl.program_id(2)
    inv_v = 1.0 / float(num_views)

    @pl.when(ci == 0)
    def _():
        cost_ref[...] = jnp.full((D, TN), b_ref[0], jnp.float32)

    # weighted variance-over-views, accumulated over this channel chunk only
    cost = cost_ref[...]
    for c in range(tc):                      # tc <= 8: small, bounded unroll
        rc = ref_ref[0, c, :][None, :]                        # (1, TN) f32
        s = rc
        sq = rc * rc
        for v in range(num_src):
            wv = warp_ref[0, v, c].astype(jnp.float32)        # (D, TN), bf16->f32
            s = s + wv
            sq = sq + wv * wv
        var_c = sq * inv_v - (s * inv_v) ** 2                 # (D, TN)
        cost = cost + var_c * w_ref[ci * tc + c]
    cost_ref[...] = cost

    @pl.when(ci == pl.num_programs(2) - 1)
    def _():
        ds = ds_ref[0]                                        # (D, TN) f32
        # softmax over depth
        m = jnp.max(cost, axis=0, keepdims=True)
        e = jnp.exp(cost - m)
        prob = e * pl.reciprocal(jnp.sum(e, axis=0, keepdims=True), approx=True)
        # depth regression
        depth = jnp.sum(prob * ds, axis=0)                    # (TN,)
        # 4-tap confidence: gather of 4*avg_pool3d(pad(prob,(1,2))) at the
        # regressed depth index == windowed prob sum over [didx-1, didx+2]
        iota_i = lax.broadcasted_iota(jnp.int32, (D, TN), 0)
        didx_f = jnp.sum(prob * iota_i.astype(jnp.float32), axis=0)
        didx = jnp.clip(jnp.floor(didx_f), 0.0, float(D - 1)).astype(jnp.int32)
        delta = iota_i - didx[None, :]
        window = jnp.logical_and(delta >= -1, delta <= 2).astype(jnp.float32)
        conf = jnp.sum(prob * window, axis=0)                 # (TN,)
        # expected variance
        samp_var = (ds - depth[None, :]) ** 2
        exp_var = lamb * jnp.sqrt(jnp.sum(samp_var * prob, axis=0))

        out_ref[0, 0, :] = depth
        out_ref[0, 1, :] = conf
        out_ref[0, 2, :] = exp_var


def compute_depth_pallas(ref_flat, warped, dsamp, w_reg, b_reg, *,
                         num_views, lamb, tn):
    # ref_flat: (B, C, N) f32; warped: (B, Vs, C, D, N) bf16; dsamp: (B, D, N)
    B, C, N = ref_flat.shape
    Vs = warped.shape[1]
    D = dsamp.shape[1]
    assert N % tn == 0
    assert D % 8 == 0, "depth samples per stage must be a multiple of 8"
    assert Vs == num_views - 1, "warped volume must hold exactly V-1 source views"
    tc = 8 if C % 8 == 0 else C              # channel chunk (grid reduction)
    kern = functools.partial(_depth_kernel, num_views=num_views, num_src=Vs,
                             tc=tc, lamb=lamb)
    return pl.pallas_call(
        kern,
        out_shape=jax.ShapeDtypeStruct((B, 3, N), jnp.float32),
        grid=(B, N // tn, C // tc),
        in_specs=[
            pl.BlockSpec((1, tc, tn), lambda bi, ti, ci: (bi, ci, ti)),
            pl.BlockSpec((1, Vs, tc, D, tn), lambda bi, ti, ci: (bi, 0, ci, 0, ti)),
            pl.BlockSpec((1, D, tn), lambda bi, ti, ci: (bi, 0, ti)),
            pl.BlockSpec(memory_space=pltpu.MemorySpace.SMEM),
            pl.BlockSpec(memory_space=pltpu.MemorySpace.SMEM),
        ],
        out_specs=pl.BlockSpec((1, 3, tn), lambda bi, ti, ci: (bi, 0, ti)),
        scratch_shapes=[pltpu.VMEM((D, tn), jnp.float32)],
        compiler_params=pltpu.CompilerParams(
            dimension_semantics=("parallel", "parallel", "arbitrary")),
    )(ref_flat, warped, dsamp, w_reg, b_reg)


# --------------------------------------------------------------------------
# geometry (plain JAX glue): pinhole homography warping with bilinear sampling
# --------------------------------------------------------------------------
def _bilinear_sample(feat, px, py):
    # feat: (B, C, H, W); px, py: (B, D, HW) pixel coords; zero padding outside
    B, C, H, W = feat.shape
    D = px.shape[1]
    flat = feat.reshape(B, C, H * W)
    x0 = jnp.floor(px)
    y0 = jnp.floor(py)

    def gather(xi, yi):
        valid = ((xi >= 0) & (xi <= W - 1) &
                 (yi >= 0) & (yi <= H - 1)).astype(feat.dtype)
        xc = jnp.clip(xi, 0, W - 1).astype(jnp.int32)
        yc = jnp.clip(yi, 0, H - 1).astype(jnp.int32)
        idx = yc * W + xc                                      # (B, D, HW)
        flat_b = jnp.broadcast_to(flat[:, :, None, :], (B, C, D, H * W))
        idx_b = jnp.broadcast_to(idx[:, None, :, :], (B, C, D, H * W))
        g = jnp.take_along_axis(flat_b, idx_b, axis=-1)        # (B, C, D, HW)
        return g * valid[:, None, :, :]

    wx1 = px - x0
    wx0 = 1.0 - wx1
    wy1 = py - y0
    wy0 = 1.0 - wy1
    out = (gather(x0, y0) * (wx0 * wy0)[:, None] +
           gather(x0 + 1.0, y0) * (wx1 * wy0)[:, None] +
           gather(x0, y0 + 1.0) * (wx0 * wy1)[:, None] +
           gather(x0 + 1.0, y0 + 1.0) * (wx1 * wy1)[:, None])
    return out                                                  # (B, C, D, HW)


def homo_warping(src_fea, src_proj, ref_proj, depth_values):
    # TODO(synk): reference homo_warping / torch.grid_sample not provided;
    # standard pinhole homography warp with bilinear zero-padded sampling.
    B, C, H, W = src_fea.shape
    D = depth_values.shape[1]
    proj = jnp.einsum('bij,bjk->bik', src_proj, jnp.linalg.inv(ref_proj))
    rot = proj[:, :3, :3]
    trans = proj[:, :3, 3]
    yy, xx = jnp.meshgrid(jnp.arange(H, dtype=jnp.float32),
                          jnp.arange(W, dtype=jnp.float32), indexing='ij')
    xyz = jnp.stack([xx.ravel(), yy.ravel(),
                     jnp.ones(H * W, jnp.float32)], axis=0)      # (3, HW)
    rot_xyz = jnp.einsum('bij,jn->bin', rot, xyz)                # (B, 3, HW)
    d = depth_values.reshape(B, 1, D, H * W)
    proj_xyz = rot_xyz[:, :, None, :] * d + trans[:, :, None, None]  # (B,3,D,HW)
    z = proj_xyz[:, 2]
    z = jnp.where(jnp.abs(z) < 1e-6, 1e-6, z)
    px = proj_xyz[:, 0] / z
    py = proj_xyz[:, 1] / z
    return _bilinear_sample(src_fea, px, py)                     # (B, C, D, HW)


# --------------------------------------------------------------------------
# depth sampling (glue)
# TODO(synk): uncertainty_aware_samples definition not provided in reference;
# uniform samples on [min,max] for stage 1, [depth-var, depth+var] after.
# --------------------------------------------------------------------------
def uncertainty_aware_samples(cur_depth, depth_min, depth_max, exp_var,
                              ndepth, shape):
    B, H, W = shape
    t = jnp.arange(ndepth, dtype=jnp.float32) / float(ndepth - 1)
    if cur_depth.ndim == 2:
        dmin = cur_depth[:, 0]
        dmax = cur_depth[:, -1]
        samps = dmin[:, None] + (dmax - dmin)[:, None] * t[None, :]   # (B, D)
        samps = jnp.broadcast_to(samps[:, :, None, None], (B, ndepth, H, W))
    else:
        low = jnp.maximum(cur_depth - exp_var, depth_min[:, None, None, None])
        high = jnp.minimum(cur_depth + exp_var, depth_max[:, None, None, None])
        samps = low + (high - low) * t[None, :, None, None]
    return samps                                                  # (B, D, H, W)


# --------------------------------------------------------------------------
# compute_depth for one stage (glue around the fused Pallas kernel)
# --------------------------------------------------------------------------
def compute_depth_stage(feats, projs, depth_samps, reg_params, lamb, num_views,
                        *, max_tile=256):
    ref_feat = feats[0]                          # (B, C, h, w)
    B, C, h, w = ref_feat.shape
    D = depth_samps.shape[1]
    N = h * w
    ref_proj = projs[:, 0]
    warped = [homo_warping(feats[v], projs[:, v], ref_proj, depth_samps)
              for v in range(1, num_views)]
    warped = jnp.stack(warped, axis=1)           # (B, Vs, C, D, N) f32

    tn = choose_tile(N, max_tile)
    ref_flat = pad_lanes(ref_feat.reshape(B, C, N), tn)
    warped_p = pad_lanes(warped, tn).astype(jnp.bfloat16)   # halve HBM read
    dsamp_p = pad_lanes(depth_samps.reshape(B, D, N), tn, pad_value=1.0)

    out = compute_depth_pallas(ref_flat, warped_p, dsamp_p,
                               reg_params['w'], reg_params['b'],
                               num_views=num_views, lamb=lamb, tn=tn)
    depth = out[:, 0, :N].reshape(B, h, w)
    conf = out[:, 1, :N].reshape(B, h, w)
    var = out[:, 2, :N].reshape(B, h, w)
    return {'depth': depth, 'photometric_confidence': conf, 'variance': var}


# --------------------------------------------------------------------------
# GeoUCSNet forward (pinhole geometry model)
# --------------------------------------------------------------------------
def init_params(key, img_channel=3, feat_ext_ch=8, num_stage=3):
    out_channels = [feat_ext_ch * 4, feat_ext_ch * 2, feat_ext_ch]
    params = {'feat': [], 'reg': []}
    for i in range(num_stage):
        key, k1, k2, k3, k4 = jax.random.split(key, 5)
        params['feat'].append({
            'w': 0.1 * jax.random.normal(k1, (out_channels[i], img_channel), jnp.float32),
            'b': 0.01 * jax.random.normal(k2, (out_channels[i], 1), jnp.float32)})
        params['reg'].append({
            'w': 0.1 * jax.random.normal(k3, (out_channels[i],), jnp.float32),
            'b': 0.01 * jax.random.normal(k4, (1,), jnp.float32)})
    return params, out_channels


def geo_ucsnet_forward(params, out_channels, imgs, proj_matrices, depth_values,
                       stage_configs=(64, 32, 8), lamb=1.5):
    # imgs: (B, V, Cin, H, W) NCHW per view
    B, V, Cin, H, W = imgs.shape
    ds_ratio = {1: 4, 2: 2, 3: 1}
    num_stage = len(stage_configs)

    # feature extraction per view, per stage (downsample + Pallas MXU 1x1 conv)
    features = []
    for v in range(V):
        img = imgs[:, v]
        feat_v = {}
        for s in range(num_stage):
            scale = ds_ratio[s + 1]
            h, w = H // scale, W // scale
            x = img.reshape(B, Cin, h, scale, w, scale).mean(axis=(3, 5))
            feat = feature_1x1(x.reshape(B, Cin, h * w),
                               params['feat'][s]['w'], params['feat'][s]['b'])
            feat_v[s] = feat.reshape(B, out_channels[s], h, w)
        features.append(feat_v)

    outputs = {}
    depth, exp_var = None, None
    prev_hw = None
    depth_min = depth_values[:, 0]
    depth_max = depth_values[:, -1]

    for s in range(num_stage):
        scale = ds_ratio[s + 1]
        h, w = H // scale, W // scale
        ndepth = stage_configs[s]

        if depth is None:
            cur_depth = depth_values
            cur_var = None
        else:
            ph, pw = prev_hw
            cur_depth = jax.image.resize(depth.reshape(B, 1, ph, pw),
                                         (B, 1, h, w), method='bilinear')
            cur_var = jax.image.resize(exp_var.reshape(B, 1, ph, pw),
                                       (B, 1, h, w), method='bilinear')

        depth_samps = uncertainty_aware_samples(cur_depth, depth_min, depth_max,
                                                cur_var, ndepth, (B, h, w))

        feats_stage = [features[v][s] for v in range(V)]
        projs_stage = proj_matrices['stage{}'.format(s + 1)]   # (B, V, 4, 4)

        out_stage = compute_depth_stage(feats_stage, projs_stage, depth_samps,
                                        params['reg'][s], lamb, num_views=V)
        depth = out_stage['depth']
        exp_var = out_stage['variance']
        prev_hw = (h, w)
        outputs['stage{}'.format(s + 1)] = out_stage
    return outputs


def make_proj_matrices(B, V, H, W):
    projs = {}
    for s, scale in zip((1, 2, 3), (4, 2, 1)):
        h, w = H // scale, W // scale
        f = float(w)
        K = jnp.array([[f, 0.0, w / 2.0, 0.0],
                       [0.0, f, h / 2.0, 0.0],
                       [0.0, 0.0, 1.0, 0.0],
                       [0.0, 0.0, 0.0, 1.0]], jnp.float32)
        mats = []
        for v in range(V):
            E = jnp.eye(4, dtype=jnp.float32).at[0, 3].set(0.1 * v)
            mats.append(K @ E)
        P = jnp.stack(mats, axis=0)
        projs['stage{}'.format(s)] = jnp.broadcast_to(P[None], (B, V, 4, 4))
    return projs


if __name__ == "__main__":
    key = jax.random.PRNGKey(0)
    k_img, k_param = jax.random.split(key)

    B, V, Cin, H, W = 2, 3, 3, 16, 16
    imgs = jax.random.uniform(k_img, (B, V, Cin, H, W), jnp.float32)
    depth_values = jnp.broadcast_to(
        jnp.linspace(2.0, 10.0, 8, dtype=jnp.float32)[None, :], (B, 8))
    proj_matrices = make_proj_matrices(B, V, H, W)

    params, out_channels = init_params(k_param, img_channel=Cin, feat_ext_ch=8)

    outputs = geo_ucsnet_forward(params, out_channels, imgs, proj_matrices,
                                 depth_values, stage_configs=(64, 32, 8), lamb=1.5)
    jax.block_until_ready(outputs)
    print("KERNEL_OK")
</pallas_src>

<mosaic_0001>
module attributes {stable_mosaic.version = 11 : i64} {
  func.func @_feat_kernel(%arg0: i32, %arg1: i32, %arg2: memref<1x3x128xf32, #tpu.memory_space<vmem>>, %arg3: memref<32x3xf32, #tpu.memory_space<vmem>>, %arg4: memref<32x1xf32, #tpu.memory_space<vmem>>, %arg5: memref<1x32x128xf32, #tpu.memory_space<vmem>>) attributes {dimension_semantics = [#tpu.dimension_semantics<parallel>, #tpu.dimension_semantics<parallel>], iteration_bounds = array<i64: 2, 1>, scalar_prefetch = 0 : i64, scratch_operands = 0 : i64, tpu.core_type = #tpu.core_type<tc>, window_params = [{transform_indices = @transform_0, window_bounds = array<i64: 1, 3, 128>}, {pipeline_mode = #tpu.pipeline_mode<synchronous>, transform_indices = @transform_1, window_bounds = array<i64: 32, 3>}, {pipeline_mode = #tpu.pipeline_mode<synchronous>, transform_indices = @transform_2, window_bounds = array<i64: 32, 1>}, {transform_indices = @transform_3, window_bounds = array<i64: 1, 32, 128>}]} {
    %c0 = arith.constant 0 : index
    %c0_0 = arith.constant 0 : index
    %c0_1 = arith.constant 0 : index
    %0 = vector.load %arg2[%c0, %c0_0, %c0_1] : memref<1x3x128xf32, #tpu.memory_space<vmem>>, vector<1x3x128xf32>
    %1 = vector.shape_cast %0 : vector<1x3x128xf32> to vector<3x128xf32>
    %c0_2 = arith.constant 0 : index
    %c0_3 = arith.constant 0 : index
    %2 = vector.load %arg3[%c0_2, %c0_3] : memref<32x3xf32, #tpu.memory_space<vmem>>, vector<32x3xf32>
    %cst = arith.constant dense<0.000000e+00> : vector<32x128xf32>
    %3 = tpu.matmul %2, %1, %cst {dimension_numbers = #tpu.dot_dimension_numbers<[1], [0], [0], [1], [0, 0, 1, 1], [], []>} : vector<32x3xf32>, vector<3x128xf32>, vector<32x128xf32> -> vector<32x128xf32>
    %c0_4 = arith.constant 0 : index
    %c0_5 = arith.constant 0 : index
    %4 = vector.load %arg4[%c0_4, %c0_5] : memref<32x1xf32, #tpu.memory_space<vmem>>, vector<32x1xf32>
    %5 = vector.broadcast %4 : vector<32x1xf32> to vector<32x128xf32>
    %6 = arith.addf %3, %5 : vector<32x128xf32>
    %cst_6 = arith.constant 0.000000e+00 : f32
    %7 = vector.broadcast %cst_6 : f32 to vector<32x128xf32>
    %8 = arith.maximumf %6, %7 : vector<32x128xf32>
    %c0_7 = arith.constant 0 : index
    %c0_8 = arith.constant 0 : index
    %c0_9 = arith.constant 0 : index
    %9 = vector.load %arg5[%c0_7, %c0_8, %c0_9] : memref<1x32x128xf32, #tpu.memory_space<vmem>>, vector<1x32x128xf32>
    %10 = vector.shape_cast %9 : vector<1x32x128xf32> to vector<32x128xf32>
    %11 = vector.shape_cast %8 : vector<32x128xf32> to vector<1x32x128xf32>
    tpu.vector_store %arg5[%c0_7, %c0_8, %c0_9], %11 {strides = array<i32>} : memref<1x32x128xf32, #tpu.memory_space<vmem>>, vector<1x32x128xf32>,
    return
  }
  func.func @transform_0(%arg0: i32, %arg1: i32) -> (i32, i32, i32) {
    %c0_i32 = arith.constant 0 : i32
    %c0_i32_0 = arith.constant 0 : i32
    return %arg0, %c0_i32, %arg1 : i32, i32, i32
  }
  func.func @transform_1(%arg0: i32, %arg1: i32) -> (i32, i32) {
    %c0_i32 = arith.constant 0 : i32
    %c0_i32_0 = arith.constant 0 : i32
    %c0_i32_1 = arith.constant 0 : i32
    return %c0_i32, %c0_i32_0 : i32, i32
  }
  func.func @transform_2(%arg0: i32, %arg1: i32) -> (i32, i32) {
    %c0_i32 = arith.constant 0 : i32
    %c0_i32_0 = arith.constant 0 : i32
    %c0_i32_1 = arith.constant 0 : i32
    return %c0_i32, %c0_i32_0 : i32, i32
  }
  func.func @transform_3(%arg0: i32, %arg1: i32) -> (i32, i32, i32) {
    %c0_i32 = arith.constant 0 : i32
    %c0_i32_0 = arith.constant 0 : i32
    return %arg0, %c0_i32, %arg1 : i32, i32, i32
  }
}

</mosaic_0001>

<bundles_post_ra>
// kernel: tpu_custom_call.1
= control target key start
LH: loop header
LB: loop body
LE: loop exit
PB: predicated region body
PF: predicated region fallthrough
CT: control target
= control target key end

     0   :  { %8 = vsyncpa [#allocation3], 0  ;;  %s760_s0 = inlined_call_operand.vmem [shape: f32[2,3,128], index: 0, kind: input, shape index: {}]   ;;  %s761_s1 = inlined_call_operand.vmem [shape: f32[32,3], index: 1, kind: input, shape index: {}]   ;;  %s762_s2 = inlined_call_operand.vmem [shape: f32[32,1], index: 2, kind: input, shape index: {}]   ;;  %s763_s3 = inlined_call_operand.hbm [shape: f32[2,32,128], index: 3, kind: output, shape index: {}]  }
   0x1   :  { %10 = vsyncpa [#allocation3 + $0x1], 0  ;;  %s617_s12 = smov 0   ;;  %s619_s13 = smov 0  }
   0x2   :  { %s621_s14 = smov 0   ;;  %s623_s15 = smov 0  }
   0x3   :  { %s625_s16 = smov 0   ;;  %s627_s17 = smov 0  }
   0x4 LB: > { %s420_s18 = sadd.s32 4294967295, %s591_s17   ;;  %s421_s19 = sadd.s32 4294967294, %s591_s17   ;;  %s591_s17 = sphi %s627_s17, %s16_s17   ;;  %s587_s16 = sphi %s625_s16, %s770_s16   ;;  %s583_s15 = sphi %s623_s15, %s769_s15   ;;  %s579_s14 = sphi %s621_s14, %s768_s14   ;;  %s575_s13 = sphi %s619_s13, %s767_s13   ;;  %s571_s12 = sphi %s617_s12, %s766_s12  }
   0x5   : > { %s28_s20 = sadd.s32 1, %s587_s16  ;;  %s107_s21 = sadd.s32 1, %s579_s14 }
   0x6   : > { %p30_p0 = scmp.ge.s32.totalorder %s28_s20, 2  ;;  %p117_p1 = scmp.ne.s32.totalorder %s579_s14, %s575_s13 }
   0x7   : > { %p118_p2 = scmp.eq.s32.totalorder %s420_s18, 1  ;;  %p123_p3 = scmp.ne.s32.totalorder %s575_s13, %s571_s12 }
   0x8   : > { %s772_s20 = smov (%p30_p0, %s28_s20), 0  ;;  %p124_p5 = scmp.eq.s32.totalorder %s421_s19, 1 }
   0x9   : > { %p657_p4 = por %p118_p2, %p117_p1  ;;  %s102_s23 = ssub.s32 %s587_s16, %s772_s20 }
   0xa   : > { %p424_p6 = scmp.ge.s32.totalorder %s591_s17, 1  ;;  %p105_p7 = scmp.eq.s32.totalorder %s102_s23, 0 }
   0xb   : > { %p664_p8 = por %p124_p5, %p123_p3  ;;  %p158_p9 = scmp.lt.s32.totalorder %s591_s17, 3 }
   0xc   : > { %s670_s25 = scalar_select %p105_p7, %s579_s14, %s107_s21  }
   0xd   : > { %p159_p10 = pnand %p424_p6, %p158_p9 }
   0xe   : > { %p184_p11 = scmp.lt.s32.totalorder (!%p159_p10), %s583_s15, 1  ;;  %v192_v0 = vld [vmem:[%s761_s1] sm:$0xff] (!%p159_p10)  ;;  %vm220_vm0 = vcmask (!%p159_p10), 23552   ;;  %v194_v1 = vld [vmem:[%s761_s1 + $0x10] sm:$0xff] (!%p159_p10)  ;;  %v593_v4 = vmov (!%p159_p10), 0   ;;  %vm233_vm1 = vcmask (!%p159_p10), 1042432  }
   0xf   : > { %162 = sbr.rel (%p159_p10) target bundleno = 261 (0x105), region = 32  ;;  %445 = vmatprep.mubr.msk.f32.mxu0 (!%p159_p10), %vm220_vm0, %v192_v0  ;;  %448 = vmatprep.mubr.msk.f32.mxu1 (!%p159_p10), %vm220_vm0, %v194_v1  ;;  %v198_v2 = vld [vmem:[%s762_s2 + $0x10] sm:$0xff] (!%p159_p10)  ;;  %v196_v3 = vld [vmem:[%s762_s2] sm:$0xff] (!%p159_p10)  ;;  %v193_v6 = vld [vmem:[%s761_s1 + $0x8] sm:$0xff] (!%p159_p10)  ;;  %s181_s30 = sand.u32 (!%p159_p10), 1, %s575_s13  }
  0x10   : > { %512 = vset.pattern.permute.xlu1 (!%p159_p10), %v593_v4  ;;  %511 = vset.pattern.permute.xlu0 (!%p159_p10), %v593_v4  ;;  %v195_v7 = vld [vmem:[%s761_s1 + $0x18] sm:$0xff] (!%p159_p10)  ;;  %v197_v9 = vld [vmem:[%s762_s2 + $0x8] sm:$0xff] (!%p159_p10)  ;;  %s425_s4 = sshll.u32 (!%p159_p10), %s181_s30, 5  ;;  %s594_s18 = smov (!%p159_p10), [#allocation2]  }
  0x11   : > { %212 = vperm.xlu1 (!%p159_p10), %512, %v198_v2   ;;  %202 = vperm.xlu0 (!%p159_p10), %511, %v196_v3   ;;  %v199_v8 = vld [vmem:[%s762_s2 + $0x18] sm:$0xff] (!%p159_p10)  ;;  %s183_s5 = scalar_lea.vmem (!%p159_p10), [#allocation2], %s425_s4  ;;  %s517_s19 = sshll.u32 (!%p159_p10), %s594_s18, 4  ;;  %s518_s19 = int_to_ptr.vmem [resolvable:$false] %s517_s19 }
  0x12   : > { %s345_s6 = sshll.u32 (!%p159_p10), %s183_s5, 4  ;;  %s519_s21 = scalar_lea.vmem (!%p159_p10), %s518_s19, 1024  ;;  %s707_s6 = int_to_ptr.vmem [resolvable:$true] %s345_s6 }
  0x13   : > { %p520_p1 = scmp.lt.s32.totalorder (!%p159_p10), %s707_s6, %s518_s19 }
  0x15   : > { %217 = vperm.xlu1 (!%p159_p10), %512, %v199_v8   ;;  %207 = vperm.xlu0 (!%p159_p10), %511, %v197_v9  }
  0x16   : > { %s185_s7 = scalar_select %p184_p11, %s583_s15, 1 }
  0x18   : > { %s426_s8 = sshll.u32 %s185_s7, 2  ;;  %s437_s7 = sshll.u32 %s583_s15, 9 }
  0x19   : > { %s190_s11 = scalar_lea.vmem %s760_s0, %s426_s8  ;;  %s712_s10 = scalar_lea.hbm %s763_s3, %s437_s7 }
  0x1a   : > { %v191_v5 = vld [vmem:[%s190_s11] sm:$0x7]  ;;  %s714_s15 = scalar_lea.sflag [#allocation3], %s181_s30  ;;  %s513_s11 = scalar_lea.vmem %s707_s6, 512 }
  0x1b   : > { %443 = vmatprep.subr.msk.mxu0 %vm233_vm1, %v191_v5  ;;  %451 = vmatprep.subr.msk.mxu1 %vm233_vm1, %v191_v5  ;;  %p514_p12 = scmp.ne.s32.totalorder %s707_s6, %s513_s11  ;;  %p521_p2 = scmp.lt.s32.totalorder %s519_s21, %s513_s11 }
  0x1c   : > { %444 = vmatpush3.msk.msra.mxu0 %vm233_vm1, %v191_v5  ;;  %452 = vmatpush3.msk.msra.mxu1 %vm233_vm1, %v191_v5 }
  0x1d   : > { %446 = vmatmul.mubr.msk.f32.vlgmr.msra.gmra.mrb[0].mxu0 %vm220_vm0, %v193_v6  ;;  %449 = vmatmul.mubr.msk.f32.vlgmr.msra.gmra.mrb[0].mxu1 %vm220_vm0, %v195_v7  ;;  %p515_p13 = pnand %p514_p12, %p657_p4  ;;  %p522_p3 = por %p521_p2, %p520_p1 }
  0x1f   : > { %p516_p0 = pneg %p515_p13 }
  0x21   : > { %p523_p5 = pnand %p522_p3, %p516_p0 }
  0x90   : > { %v213_v10 = vpop.permute.xlu1 %212  ;;  %v203_v11 = vpop.permute.xlu0 %202 }
  0x94   : > { %v218_v12 = vpop.permute.xlu1 %217  ;;  %v208_v13 = vpop.permute.xlu0 %207 }
  0xf0   : > { %v447_v14 = vpop.f32.mrb[0].mxu0  ;;  %v450_v15 = vpop.f32.mrb[0].mxu1 }
  0xf1   : > { %v309_v16 = vadd.f32 %v447_v14, %v208_v13  ;;  %v319_v17 = vadd.f32 %v450_v15, %v218_v12  ;;  %v303_v18 = vpop.f32.mrb[1].mxu0  ;;  %v313_v19 = vpop.f32.mrb[1].mxu1 }
  0xf2   : > { %v304_v20 = vadd.f32 %v303_v18, %v203_v11  ;;  %v314_v21 = vadd.f32 %v313_v19, %v213_v10 }
  0xf3   : > { %v323_v22 = vmax.f32 %v309_v16, 0.0  ;;  %v325_v23 = vmax.f32 %v319_v17, 0.0 }
  0xf4   : > { %v322_v24 = vmax.f32 %v304_v20, 0.0  ;;  %v324_v25 = vmax.f32 %v314_v21, 0.0 }
  0xf5   : > { %327 = vst [vmem:[%s183_s5 + $0x8] sm:$0xff] %v323_v22  ;;  %329 = vst [vmem:[%s183_s5 + $0x18] sm:$0xff] %v325_v23 }
  0xf6   : > { %326 = vst [vmem:[%s183_s5] sm:$0xff] %v322_v24  ;;  %328 = vst [vmem:[%s183_s5 + $0x10] sm:$0xff] %v324_v25 }
  0xf7   : > { %526 = shalt.err (!%p523_p5)
}
  0xf8   : > { %s527_s23 = scalar_lea.hbm %s712_s10, 512  ;;  %s531_s28 = scalar_lea.hbm %s763_s3, 1024 }
  0xf9   : > { %p528_p6 = scmp.ne.s32.totalorder %s712_s10, %s527_s23  ;;  %p532_p10 = scmp.lt.u32.totalorder %s712_s10, %s763_s3 }
  0xfa   : > { %p533_p11 = scmp.lt.u32.totalorder %s531_s28, %s527_s23  ;;  %p535_p13 = scmp.lt.u32.totalorder %s527_s23, %s712_s10 }
  0xfb   : > { %p529_p7 = pnand %p528_p6, %p657_p4 }
  0xfc   : > { %p534_p12 = por %p533_p11, %p532_p10 }
  0xfd   : > { %p530_p9 = pneg %p529_p7 }
  0xfe   : > { %p536_p0 = por %p535_p13, %p534_p12 }
 0x100   : > { %p537_p1 = pnand %p536_p0, %p530_p9 }
 0x102   : > { %540 = shalt.err (!%p537_p1)
}
 0x103   : > { %s595_s4 = smov 128   ;;  %s596_s5 = smov 8  }
 0x104   : > { %453 = dma.vmem_to_hbm [thread:$0]  (%p657_p4), %s707_s6, 512, %s712_s10, %s714_s15, %s595_s4, %s595_s4, %s596_s5  }
 0x105 PF: > { %p459_p2 = scmp.ge.s32.totalorder %s591_s17, 2  ;;  %s360_s7 = sand.u32 1, %s571_s12  }
 0x106   : > { %s361_s8 = scalar_lea.sflag [#allocation3], %s360_s7 }
 0x107   : > { %p456_p3 = pnand %p459_p2, %p664_p8 }
 0x109   : > { %566 = dma.done.wait (!%p456_p3), %s361_s8, 512  }
 0x10a   : > { %568 = vsyncadd (!%p456_p3), %s361_s8, 4294966784  ;;  %s16_s17 = sadd.s32 1, %s591_s17   ;;  %s766_s12 = smov %s575_s13 }
 0x10b   : > { %p13_p5 = scmp.ge.s32.totalorder %s16_s17, 4   ;;  %s767_s13 = smov %s579_s14 }
 0x10c   : > { %s768_s14 = smov %s670_s25  ;;  %s769_s15 = smov %s587_s16 }
 0x10d   : > { %s770_s16 = smov %s772_s20  ;;  %15 = sbr.rel (!%p13_p5) target bundleno = 4 (0x4), region = 67 }
 0x114   :  { %366 = vsyncpa [#allocation3], 1 }
 0x115   :  { %368 = vsyncpa [#allocation3 + $0x1], 1 }

</bundles_post_ra>
